<compile_context>
chip_gen: v7x
topology: tpu7x:2x2x1
jax: 0.10.0
libtpu: 0.0.40
codegen_flags: <defaults>
</compile_context>

<pallas_src>
import jax
import jax.numpy as jnp
from jax.experimental import pallas as pl
from jax.experimental.pallas import tpu as pltpu

H = 32          # num_hidden
N = 16          # number of nodes
E = 128         # number of edges  (lane axis inside the kernel)
EPS = 1e-5
_INV_SQRT2 = 0.7071067811865476


def _gelu_exact(x):
    # PyTorch nn.GELU() default: exact erf formulation.
    return 0.5 * x * (1.0 + jax.lax.erf(x * _INV_SQRT2))


# ------------------------------------------------------------ fused kernel --
def edge_mlp_kernel(idx_ref, hVT_ref, hET_ref, w1_ref, w2_ref, vecs_ref,
                    oT_ref):
    """gather + message MLP + residual + BatchNorm, all in [H, E] layout."""
    # ---- in-kernel gather via one-hot MXU matmul --------------------------
    idx = idx_ref[...]                                          # [2, E] int32
    iota_n = jax.lax.broadcasted_iota(jnp.int32, (N, E), 0)     # [N, E]
    src_oh = (iota_n == idx[0:1, :]).astype(jnp.float32)        # [N, E]
    dst_oh = (iota_n == idx[1:2, :]).astype(jnp.float32)        # [N, E]

    hVT = hVT_ref[...]                                          # [H, N]
    h_src_T = jnp.dot(hVT, src_oh, preferred_element_type=jnp.float32)  # [H,E]
    h_dst_T = jnp.dot(hVT, dst_oh, preferred_element_type=jnp.float32)  # [H,E]
    hET = hET_ref[...]                                          # [H, E]

    # cat([h_src, h_E, h_dst], -1)^T  ==  stack along sublanes -> [3H, E]
    hEV_T = jnp.concatenate([h_src_T, hET, h_dst_T], axis=0)    # [3H, E]

    # packed per-feature vectors as lane-broadcastable columns [H, 1]
    b1 = vecs_ref[:, 0:1]
    b2 = vecs_ref[:, 1:2]
    gamma = vecs_ref[:, 2:3]
    beta = vecs_ref[:, 3:4]

    # ---- message MLP (one K=3H matmul + one K=H matmul, E on lanes) -------
    pre = jnp.dot(w1_ref[...], hEV_T,
                  preferred_element_type=jnp.float32) + b1      # [H, E]
    act = _gelu_exact(pre)
    msg = jnp.dot(w2_ref[...], act,
                  preferred_element_type=jnp.float32) + b2      # [H, E]

    # dropout (p=0.2) is identity in eval mode.
    y = hET + msg                                               # [H, E]

    # ---- BatchNorm1d (batch stats, biased var, two-pass, folded FMA) ------
    mean = jnp.mean(y, axis=1, keepdims=True)                   # [H, 1]
    d = y - mean
    var = jnp.mean(d * d, axis=1, keepdims=True)                # [H, 1]
    scale = gamma * jax.lax.rsqrt(var + EPS)                    # [H, 1]
    oT_ref[...] = d * scale + beta                              # [H, E]


_COST = pl.CostEstimate(
    flops=2 * H * E * (2 * N + 4 * H) + 18 * H * E,
    transcendentals=H * E,
    bytes_accessed=4 * (2 * E + H * N + H * E + 3 * H * H + H * H + 4 * H
                        + H * E),
)


# ----------------------------------------------------------------- wrapper --
def edge_mlp_forward(h_V, edge_index, h_E, params):
    # Tiny one-time layout glue: put the edge axis on lanes.
    hVT = h_V.T                                   # [H, N]
    hET = h_E.T                                   # [H, E]
    w1 = params["W11_w"]                          # [H, 3H]  (used as-is)
    w2 = params["W12_w"]                          # [H, H]   (used as-is)
    vecs = jnp.stack([params["W11_b"], params["W12_b"],
                      params["bn_gamma"], params["bn_beta"]], axis=1)  # [H, 4]

    vmem = pl.BlockSpec(memory_space=pltpu.MemorySpace.VMEM)

    outT = pl.pallas_call(
        edge_mlp_kernel,
        out_shape=jax.ShapeDtypeStruct((H, E), jnp.float32),
        in_specs=[vmem] * 6,
        out_specs=vmem,
        cost_estimate=_COST,
    )(edge_index.astype(jnp.int32), hVT, hET, w1, w2, vecs)

    return outT.T                                 # [E, H]


# --------------------------------------------------------------- reference --
def edge_mlp_reference(h_V, edge_index, h_E, params):
    h_ev = jnp.concatenate(
        [h_V[edge_index[0]], h_E, h_V[edge_index[1]]], axis=-1)
    pre = h_ev @ params["W11_w"].T + params["W11_b"]
    msg = _gelu_exact(pre) @ params["W12_w"].T + params["W12_b"]
    y = h_E + msg
    mean = jnp.mean(y, axis=0, keepdims=True)
    var = jnp.mean((y - mean) ** 2, axis=0, keepdims=True)
    return (y - mean) * jax.lax.rsqrt(var + EPS) * params["bn_gamma"] \
        + params["bn_beta"]


if __name__ == "__main__":
    key = jax.random.PRNGKey(0)
    k1, k2, k3, k4, k5, k6, k7 = jax.random.split(key, 7)

    h_V = jax.random.normal(k1, (N, H), dtype=jnp.float32)
    h_E = jax.random.normal(k2, (E, H), dtype=jnp.float32)
    edge_index = jnp.stack([
        jax.random.randint(k3, (E,), 0, N, dtype=jnp.int32),
        jax.random.randint(k4, (E,), 0, N, dtype=jnp.int32),
    ], axis=0)

    params = {
        "W11_w": jax.random.normal(k5, (H, 3 * H), dtype=jnp.float32) * 0.1,
        "W11_b": jax.random.normal(k6, (H,), dtype=jnp.float32) * 0.1,
        "W12_w": jax.random.normal(k7, (H, H), dtype=jnp.float32) * 0.1,
        "W12_b": jnp.zeros((H,), dtype=jnp.float32),
        "bn_gamma": jnp.ones((H,), dtype=jnp.float32),   # PyTorch BN init
        "bn_beta": jnp.zeros((H,), dtype=jnp.float32),
    }

    out = jax.block_until_ready(edge_mlp_forward(h_V, edge_index, h_E, params))
    ref = edge_mlp_reference(h_V, edge_index, h_E, params)

    assert out.shape == (E, H)
    # Tolerance covers MXU accumulation-order differences between the kernel's
    # transposed dots and the reference's natural-orientation dots.
    assert jnp.allclose(out, ref, atol=1e-4, rtol=1e-4), (
        f"max abs err {jnp.max(jnp.abs(out - ref))}")
    print("KERNEL_OK")
</pallas_src>

<mosaic_0001>
module attributes {stable_mosaic.version = 11 : i64} {
  func.func @edge_mlp_kernel(%arg0: memref<2x128xi32, #tpu.memory_space<vmem>>, %arg1: memref<32x16xf32, #tpu.memory_space<vmem>>, %arg2: memref<32x128xf32, #tpu.memory_space<vmem>>, %arg3: memref<32x96xf32, #tpu.memory_space<vmem>>, %arg4: memref<32x32xf32, #tpu.memory_space<vmem>>, %arg5: memref<32x4xf32, #tpu.memory_space<vmem>>, %arg6: memref<32x128xf32, #tpu.memory_space<vmem>>) attributes {dimension_semantics = [], scalar_prefetch = 0 : i64, scratch_operands = 0 : i64, tpu.core_type = #tpu.core_type<tc>} {
    %c0 = arith.constant 0 : index
    %c0_0 = arith.constant 0 : index
    %0 = vector.load %arg0[%c0, %c0_0] : memref<2x128xi32, #tpu.memory_space<vmem>>, vector<2x128xi32>
    %1 = tpu.iota {dimensions = array<i32: 0>} : vector<16x128xi32>
    %2 = vector.extract_strided_slice %0 {offsets = [0, 0], sizes = [1, 128], strides = [1, 1]} : vector<2x128xi32> to vector<1x128xi32>
    %3 = vector.broadcast %2 : vector<1x128xi32> to vector<16x128xi32>
    %4 = arith.cmpi eq, %1, %3 : vector<16x128xi32>
    %5 = arith.extui %4 : vector<16x128xi1> to vector<16x128xi32>
    %6 = arith.sitofp %5 : vector<16x128xi32> to vector<16x128xf32>
    %7 = vector.extract_strided_slice %0 {offsets = [1, 0], sizes = [1, 128], strides = [1, 1]} : vector<2x128xi32> to vector<1x128xi32>
    %8 = vector.broadcast %7 : vector<1x128xi32> to vector<16x128xi32>
    %9 = arith.cmpi eq, %1, %8 : vector<16x128xi32>
    %10 = arith.extui %9 : vector<16x128xi1> to vector<16x128xi32>
    %11 = arith.sitofp %10 : vector<16x128xi32> to vector<16x128xf32>
    %c0_1 = arith.constant 0 : index
    %c0_2 = arith.constant 0 : index
    %12 = vector.load %arg1[%c0_1, %c0_2] : memref<32x16xf32, #tpu.memory_space<vmem>>, vector<32x16xf32>
    %cst = arith.constant dense<0.000000e+00> : vector<32x128xf32>
    %13 = tpu.matmul %12, %6, %cst {dimension_numbers = #tpu.dot_dimension_numbers<[1], [0], [0], [1], [0, 0, 1, 1], [], []>} : vector<32x16xf32>, vector<16x128xf32>, vector<32x128xf32> -> vector<32x128xf32>
    %cst_3 = arith.constant dense<0.000000e+00> : vector<32x128xf32>
    %14 = tpu.matmul %12, %11, %cst_3 {dimension_numbers = #tpu.dot_dimension_numbers<[1], [0], [0], [1], [0, 0, 1, 1], [], []>} : vector<32x16xf32>, vector<16x128xf32>, vector<32x128xf32> -> vector<32x128xf32>
    %c0_4 = arith.constant 0 : index
    %c0_5 = arith.constant 0 : index
    %15 = vector.load %arg2[%c0_4, %c0_5] : memref<32x128xf32, #tpu.memory_space<vmem>>, vector<32x128xf32>
    %16 = tpu.concatenate %13, %15, %14 in 0 : vector<32x128xf32>, vector<32x128xf32>, vector<32x128xf32> -> vector<96x128xf32>
    %c0_6 = arith.constant 0 : index
    %c0_7 = arith.constant 0 : index
    %17 = vector.load %arg5[%c0_6, %c0_7] : memref<32x4xf32, #tpu.memory_space<vmem>>, vector<32x1xf32>
    %c0_8 = arith.constant 0 : index
    %c1 = arith.constant 1 : index
    %18 = vector.load %arg5[%c0_8, %c1] : memref<32x4xf32, #tpu.memory_space<vmem>>, vector<32x1xf32>
    %c0_9 = arith.constant 0 : index
    %c2 = arith.constant 2 : index
    %19 = vector.load %arg5[%c0_9, %c2] : memref<32x4xf32, #tpu.memory_space<vmem>>, vector<32x1xf32>
    %c0_10 = arith.constant 0 : index
    %c3 = arith.constant 3 : index
    %20 = vector.load %arg5[%c0_10, %c3] : memref<32x4xf32, #tpu.memory_space<vmem>>, vector<32x1xf32>
    %c0_11 = arith.constant 0 : index
    %c0_12 = arith.constant 0 : index
    %21 = vector.load %arg3[%c0_11, %c0_12] : memref<32x96xf32, #tpu.memory_space<vmem>>, vector<32x96xf32>
    %cst_13 = arith.constant dense<0.000000e+00> : vector<32x128xf32>
    %22 = tpu.matmul %21, %16, %cst_13 {dimension_numbers = #tpu.dot_dimension_numbers<[1], [0], [0], [1], [0, 0, 1, 1], [], []>} : vector<32x96xf32>, vector<96x128xf32>, vector<32x128xf32> -> vector<32x128xf32>
    %23 = vector.broadcast %17 : vector<32x1xf32> to vector<32x128xf32>
    %24 = arith.addf %22, %23 : vector<32x128xf32>
    %cst_14 = arith.constant 5.000000e-01 : f32
    %25 = vector.broadcast %cst_14 : f32 to vector<32x128xf32>
    %26 = arith.mulf %25, %24 : vector<32x128xf32>
    %cst_15 = arith.constant 0.707106769 : f32
    %27 = vector.broadcast %cst_15 : f32 to vector<32x128xf32>
    %28 = arith.mulf %24, %27 : vector<32x128xf32>
    %29 = math.erf %28 : vector<32x128xf32>
    %cst_16 = arith.constant 1.000000e+00 : f32
    %30 = vector.broadcast %cst_16 : f32 to vector<32x128xf32>
    %31 = arith.addf %30, %29 : vector<32x128xf32>
    %32 = arith.mulf %26, %31 : vector<32x128xf32>
    %c0_17 = arith.constant 0 : index
    %c0_18 = arith.constant 0 : index
    %33 = vector.load %arg4[%c0_17, %c0_18] : memref<32x32xf32, #tpu.memory_space<vmem>>, vector<32x32xf32>
    %cst_19 = arith.constant dense<0.000000e+00> : vector<32x128xf32>
    %34 = tpu.matmul %33, %32, %cst_19 {dimension_numbers = #tpu.dot_dimension_numbers<[1], [0], [0], [1], [0, 0, 1, 1], [], []>} : vector<32x32xf32>, vector<32x128xf32>, vector<32x128xf32> -> vector<32x128xf32>
    %35 = vector.broadcast %18 : vector<32x1xf32> to vector<32x128xf32>
    %36 = arith.addf %34, %35 : vector<32x128xf32>
    %37 = arith.addf %15, %36 : vector<32x128xf32>
    %cst_20 = arith.constant dense<0.000000e+00> : vector<32xf32>
    %38 = vector.multi_reduction <add>, %37, %cst_20 [1] : vector<32x128xf32> to vector<32xf32>
    %39 = vector.shape_cast %38 : vector<32xf32> to vector<32x1xf32>
    %cst_21 = arith.constant 1.280000e+02 : f32
    %40 = vector.broadcast %cst_21 : f32 to vector<32x1xf32>
    %41 = arith.divf %39, %40 : vector<32x1xf32>
    %42 = vector.broadcast %41 : vector<32x1xf32> to vector<32x128xf32>
    %43 = arith.subf %37, %42 : vector<32x128xf32>
    %44 = arith.mulf %43, %43 : vector<32x128xf32>
    %cst_22 = arith.constant dense<0.000000e+00> : vector<32xf32>
    %45 = vector.multi_reduction <add>, %44, %cst_22 [1] : vector<32x128xf32> to vector<32xf32>
    %46 = vector.shape_cast %45 : vector<32xf32> to vector<32x1xf32>
    %cst_23 = arith.constant 1.280000e+02 : f32
    %47 = vector.broadcast %cst_23 : f32 to vector<32x1xf32>
    %48 = arith.divf %46, %47 : vector<32x1xf32>
    %cst_24 = arith.constant 9.99999974E-6 : f32
    %49 = vector.broadcast %cst_24 : f32 to vector<32x1xf32>
    %50 = arith.addf %48, %49 : vector<32x1xf32>
    %51 = math.rsqrt %50 : vector<32x1xf32>
    %52 = arith.mulf %19, %51 : vector<32x1xf32>
    %53 = vector.broadcast %52 : vector<32x1xf32> to vector<32x128xf32>
    %54 = arith.mulf %43, %53 : vector<32x128xf32>
    %55 = vector.broadcast %20 : vector<32x1xf32> to vector<32x128xf32>
    %56 = arith.addf %54, %55 : vector<32x128xf32>
    %c0_25 = arith.constant 0 : index
    %c0_26 = arith.constant 0 : index
    %57 = vector.load %arg6[%c0_25, %c0_26] : memref<32x128xf32, #tpu.memory_space<vmem>>, vector<32x128xf32>
    tpu.vector_store %arg6[%c0_25, %c0_26], %56 {strides = array<i32>} : memref<32x128xf32, #tpu.memory_space<vmem>>, vector<32x128xf32>,
    return
  }
}

</mosaic_0001>

<bundles_post_ra>
// kernel: tpu_custom_call.1
= control target key start
LH: loop header
LB: loop body
LE: loop exit
PB: predicated region body
PF: predicated region fallthrough
CT: control target
= control target key end

     0   :  { %v25_v0 = vlaneseq  ;;  %vm52_vm0 = vcmask 130048   ;;  %s1017_s0 = inlined_call_operand.vmem [shape: s32[2,128], index: 0, kind: input, shape index: {}]   ;;  %s1018_s1 = inlined_call_operand.vmem [shape: f32[32,16], index: 1, kind: input, shape index: {}]   ;;  %s1019_s2 = inlined_call_operand.vmem [shape: f32[32,128], index: 2, kind: input, shape index: {}]   ;;  %s1020_s3 = inlined_call_operand.vmem [shape: f32[32,96], index: 3, kind: input, shape index: {}]   ;;  %s1021_s4 = inlined_call_operand.vmem [shape: f32[32,32], index: 4, kind: input, shape index: {}]   ;;  %s1022_s5 = inlined_call_operand.vmem [shape: f32[32,4], index: 5, kind: input, shape index: {}]   ;;  %s1023_s6 = inlined_call_operand.hbm [shape: f32[32,128], index: 6, kind: output, shape index: {}]  }
   0x1   :  { %v48_v1 = vld [vmem:[%s1018_s1] sm:$0xff] }
   0x2   :  { %680 = vmatprep.mubr.msk.f32.mxu1 %vm52_vm0, %v48_v1  ;;  %v26_v2 = vshrl.u32 %v25_v0, 7 }
   0x3   :  { %11 = vsyncpa [#allocation3], 0  ;;  %v24_v3 = vld [vmem:[%s1017_s0] sm:$0x3]  ;;  %v838_v9 = vmov 1.0|1.0  }
   0x4   :  { %v27_v4 = vadd.s32 8, %v26_v2  ;;  %v30_v5 = vsub.s32 0, %v26_v2  ;;  %v40_v6 = vsub.s32 1, %v26_v2  ;;  %v49_v10 = vld [vmem:[%s1018_s1 + $0x8] sm:$0xff]  ;;  %v50_v11 = vld [vmem:[%s1018_s1 + $0x10] sm:$0xff]  ;;  %v51_v12 = vld [vmem:[%s1018_s1 + $0x18] sm:$0xff] }
   0x5   :  { %v243_v13 = vld [vmem:[%s1020_s3] sm:$0xff]  ;;  %vm267_vm7 = vcmask 785408   ;;  %v916_v15 = vld [vmem:[%s1022_s5 + $0x10] sm:$0xff]  ;;  %v839_v16 = vmov 0   ;;  %v923_v17 = vld [vmem:[%s1022_s5 + $0x8] sm:$0xff]  ;;  %vm405_vm8 = vcmask 261120  }
   0x6   :  { %v31_v7 = vrot.slane %v24_v3, %v30_v5  ;;  %v41_v8 = vrot.slane %v24_v3, %v40_v6  ;;  %720 = vmatprep.mubr.msk.f32.mxu0 %vm267_vm7, %v243_v13  ;;  %v911_v14 = vld [vmem:[%s1022_s5] sm:$0xff]  ;;  %788 = vset.pattern.permute.xlu0 %v839_v16  ;;  %v928_v18 = vld [vmem:[%s1022_s5 + $0x18] sm:$0xff]  ;;  %v940_v23 = vld [vmem:[%s1019_s2 + $0x8] sm:$0xff]  ;;  %v840_v41 = vmov 1  }
   0x7   :  { %789 = vset.pattern.permute.xlu1 %v839_v16  ;;  %249 = vperm.xlu0 %788, %v911_v14   ;;  %v935_v22 = vld [vmem:[%s1019_s2] sm:$0xff]  ;;  %v947_v28 = vld [vmem:[%s1019_s2 + $0x10] sm:$0xff]  ;;  %v952_v29 = vld [vmem:[%s1019_s2 + $0x18] sm:$0xff] }
   0x8   :  { %vm32_vm1 = vcmp.eq.s32.totalorder %v26_v2, %v31_v7  ;;  %vm33_vm2 = vcmp.eq.s32.totalorder %v27_v4, %v31_v7  ;;  %vm42_vm3 = vcmp.eq.s32.totalorder %v26_v2, %v41_v8  ;;  %vm43_vm4 = vcmp.eq.s32.totalorder %v27_v4, %v41_v8  ;;  %259 = vperm.xlu1 %789, %v916_v15   ;;  %v244_v37 = vld [vmem:[%s1020_s3 + $0x8] sm:$0xff]  ;;  %v245_v38 = vld [vmem:[%s1020_s3 + $0x10] sm:$0xff]  ;;  %v246_v39 = vld [vmem:[%s1020_s3 + $0x18] sm:$0xff] }
   0x9   :  { %vm740_vm5 = vmpackc.low %vm33_vm2, %vm32_vm1  ;;  %v756_v27 = vpack.c.bf16 %v940_v23, %v935_v22  ;;  %v760_v33 = vpack.c.bf16 %v952_v29, %v947_v28  ;;  %v385_v40 = vld [vmem:[%s1021_s4] sm:$0xff]  ;;  %v387_v13 = vld [vmem:[%s1021_s4 + $0x10] sm:$0xff] }
   0xa   :  { %741 = vmatprep.subr.msk.bf16.mxu1 %vm740_vm5, %v838_v9  ;;  %vm744_vm6 = vmpackc.low %vm43_vm4, %vm42_vm3  ;;  %v388_v16 = vld [vmem:[%s1021_s4 + $0x18] sm:$0xff] }
   0xb   :  { %743 = vmatpush3.bf16.msk.msra.mxu1 %vm740_vm5, %v838_v9  ;;  %254 = vperm.xlu0 %788, %v923_v17  }
   0xc   :  { %745 = vmatprep.subr.msk.bf16.mxu1 %vm744_vm6, %v838_v9  ;;  %264 = vperm.xlu1 %789, %v928_v18  }
   0xe   :  { %681 = vmatmul.mubr.msk.f32.vlgmr.msra.gmra.mrb[0].mxu1 %vm52_vm0, %v49_v10 }
   0xf   :  { %683 = vmatprep.mubr.msk.f32.mxu1 %vm52_vm0, %v50_v11  ;;  %747 = vmatpush3.bf16.msk.msra.mxu1 %vm744_vm6, %v838_v9 }
  0x10   :  { %791 = vset.pattern.permute.xlu1 %v840_v41  ;;  %790 = vset.pattern.permute.xlu0 %v840_v41 }
  0x11   :  { %394 = vperm.xlu1 %791, %v923_v17   ;;  %390 = vperm.xlu0 %790, %v911_v14  }
  0x12   :  { %684 = vmatmul.mubr.msk.f32.gmra.mrb[2].mxu1 %vm52_vm0, %v51_v12 }
  0x13   :  { %690 = vmatprep.mubr.msk.f32.mxu1 %vm52_vm0, %v48_v1 }
  0x15   :  { %398 = vperm.xlu1 %791, %v916_v15   ;;  %402 = vperm.xlu0 %790, %v928_v18  }
  0x16   :  { %691 = vmatmul.mubr.msk.f32.vlgmr.msra.gmra.mrb[4].mxu1 %vm52_vm0, %v49_v10 }
  0x17   :  { %693 = vmatprep.mubr.msk.f32.mxu1 %vm52_vm0, %v50_v11 }
  0x1a   :  { %694 = vmatmul.mubr.msk.f32.gmra.mrb[6].mxu1 %vm52_vm0, %v51_v12  ;;  %v386_v12 = vld [vmem:[%s1021_s4 + $0x8] sm:$0xff]  ;;  %s843_s4 = smov [#allocation2]  }
  0x1b   :  { %734 = vmatprep.mubr.msk.f32.mxu1 %vm405_vm8, %v385_v40  ;;  %s605_s1 = sshll.u32 %s843_s4, 4  ;;  %s606_s1 = int_to_ptr.vmem [resolvable:$true] %s605_s1 }
  0x1c   :  { %s814_s9 = scalar_lea.vmem %s606_s1, 512  ;;  %p819_p1 = scmp.lt.s32.totalorder %s606_s1, %s606_s1 }
  0x1d   :  { %p815_p0 = scmp.ne.s32.totalorder %s606_s1, %s814_s9  ;;  %p820_p2 = scmp.lt.s32.totalorder %s814_s9, %s814_s9 }
  0x1f   :  { %p821_p3 = por %p820_p2, %p819_p1 }
  0x21   :  { %p822_p4 = pnand %p821_p3, %p815_p0 }
  0x86   :  { %v250_v42 = vpop.permute.xlu0 %249 }
  0x87   :  { %v260_v43 = vpop.permute.xlu1 %259 }
  0x8a   :  { %v255_v44 = vpop.permute.xlu0 %254 }
  0x8b   :  { %v265_v50 = vpop.permute.xlu1 %264 }
  0xe1   :  { %v682_v19 = vpop.f32.mrb[0].mxu1 }
  0xe2   :  { %v131_v20 = vpop.f32.mrb[1].mxu1 }
  0xe3   :  { %v748_v21 = vpack.c.bf16 %v682_v19, %v131_v20  ;;  %v391_v19 = vpop.permute.xlu0 %390  ;;  %v395_v20 = vpop.permute.xlu1 %394 }
  0xe5   :  { %v685_v24 = vpop.f32.mrb[2].mxu1  ;;  %749 = vmatprep.subr.bf16.mxu0 %v748_v21 }
  0xe6   :  { %v141_v25 = vpop.f32.mrb[3].mxu1  ;;  %751 = vmatpush3.bf16.msra.mxu0 %v748_v21 }
  0xe7   :  { %v752_v26 = vpack.c.bf16 %v685_v24, %v141_v25 }
  0xe9   :  { %753 = vmatprep.subr.bf16.mxu0 %v752_v26  ;;  %v692_v30 = vpop.f32.mrb[4].mxu1 }
  0xea   :  { %755 = vmatpush3.bf16.msra.mxu0 %v752_v26  ;;  %v216_v31 = vpop.f32.mrb[5].mxu1 }
  0xeb   :  { %757 = vmatprep.subr.bf16.mxu0 %v756_v27  ;;  %v764_v32 = vpack.c.bf16 %v692_v30, %v216_v31 }
  0xed   :  { %v695_v34 = vpop.f32.mrb[6].mxu1 }
  0xee   :  { %759 = vmatpush3.bf16.msra.mxu0 %v756_v27  ;;  %v226_v35 = vpop.f32.mrb[7].mxu1  ;;  %v403_v27 = vpop.permute.xlu0 %402 }
  0xef   :  { %761 = vmatprep.subr.bf16.mxu0 %v760_v33  ;;  %v768_v36 = vpack.c.bf16 %v695_v34, %v226_v35 }
  0xf2   :  { %763 = vmatpush3.bf16.msra.mxu0 %v760_v33  ;;  %v399_v33 = vpop.permute.xlu1 %398 }
  0xf3   :  { %765 = vmatprep.subr.bf16.mxu0 %v764_v32 }
  0xf6   :  { %767 = vmatpush3.bf16.msra.mxu0 %v764_v32 }
  0xf7   :  { %769 = vmatprep.subr.bf16.mxu0 %v768_v36 }
  0xfa   :  { %771 = vmatpush3.bf16.msra.mxu0 %v768_v36 }
  0xfd   :  { %721 = vmatmul.mubr.msk.f32.vlgmr.msra.gmra.mrb[0].mxu0 %vm267_vm7, %v244_v37 }
  0xfe   :  { %723 = vmatprep.mubr.msk.f32.mxu0 %vm267_vm7, %v245_v38 }
 0x101   :  { %724 = vmatmul.mubr.msk.f32.gmra.mrb[2].mxu0 %vm267_vm7, %v246_v39 }
 0x1d0   :  { %v722_v45 = vpop.f32.mrb[0].mxu0 }
 0x1d1   :  { %v352_v46 = vadd.f32 %v722_v45, %v255_v44  ;;  %v346_v47 = vpop.f32.mrb[1].mxu0 }
 0x1d2   :  { %v347_v48 = vadd.f32 %v346_v47, %v250_v42 }
 0x1d3   :  { %v370_v49 = vmul.f32 0.70710677, %v352_v46  ;;  %v366_v60 = vmul.f32 0.5, %v352_v46 }
 0x1d4   :  { %v369_v51 = vmul.f32 0.70710677, %v347_v48  ;;  %v725_v52 = vpop.f32.mrb[2].mxu0  ;;  %v365_v62 = vmul.f32 0.5, %v347_v48 }
 0x1d5   :  { %798 = verf.f32 %v370_v49  ;;  %v362_v53 = vadd.f32 %v725_v52, %v265_v50  ;;  %v356_v54 = vpop.f32.mrb[3].mxu0 }
 0x1d6   :  { %800 = verf.f32 %v369_v51  ;;  %v357_v55 = vadd.f32 %v356_v54, %v260_v43  ;;  %v841_v51 = vmov 2  }
 0x1d7   :  { %v372_v56 = vmul.f32 0.70710677, %v362_v53  ;;  %v368_v4 = vmul.f32 0.5, %v362_v53  ;;  %793 = vset.pattern.permute.xlu1 %v841_v51  ;;  %792 = vset.pattern.permute.xlu0 %v841_v51 }
 0x1d8   :  { %v371_v57 = vmul.f32 0.70710677, %v357_v55  ;;  %v367_v6 = vmul.f32 0.5, %v357_v55 }
 0x1d9   :  { %802 = verf.f32 %v372_v56 }
 0x1da   :  { %804 = verf.f32 %v371_v57 }
 0x1df   :  { %v799_v58 = vpop.eup %798 }
 0x1e0   :  { %v801_v59 = vpop.eup %800  ;;  %v378_v61 = vadd.f32 1.0, %v799_v58 }
 0x1e1   :  { %v377_v63 = vadd.f32 1.0, %v801_v59 }
 0x1e2   :  { %v382_v0 = vmul.f32 %v378_v61, %v366_v60 }
 0x1e3   :  { %v803_v1 = vpop.eup %802  ;;  %v381_v2 = vmul.f32 %v377_v63, %v365_v62 }
 0x1e4   :  { %v805_v3 = vpop.eup %804  ;;  %v380_v5 = vadd.f32 1.0, %v803_v1 }
 0x1e5   :  { %v379_v7 = vadd.f32 1.0, %v805_v3  ;;  %v772_v8 = vpack.c.bf16 %v382_v0, %v381_v2 }
 0x1e6   :  { %v384_v9 = vmul.f32 %v380_v5, %v368_v4  ;;  %v842_v4 = vmov 3  }
 0x1e7   :  { %v383_v10 = vmul.f32 %v379_v7, %v367_v6  ;;  %773 = vmatprep.subr.bf16.mxu1 %v772_v8 }
 0x1e8   :  { %775 = vmatpush3.bf16.msra.mxu1 %v772_v8 }
 0x1e9   :  { %v776_v11 = vpack.c.bf16 %v384_v9, %v383_v10 }
 0x1eb   :  { %777 = vmatprep.subr.bf16.mxu1 %v776_v11 }
 0x1ec   :  { %779 = vmatpush3.bf16.msra.mxu1 %v776_v11 }
 0x1ef   :  { %735 = vmatmul.mubr.msk.f32.vlgmr.msra.gmra.mrb[8].mxu1 %vm405_vm8, %v386_v12 }
 0x1f0   :  { %737 = vmatprep.mubr.msk.f32.mxu1 %vm405_vm8, %v387_v13 }
 0x1f3   :  { %738 = vmatmul.mubr.msk.f32.gmra.mrb[10].mxu1 %vm405_vm8, %v388_v16 }
 0x2c2   :  { %v736_v21 = vpop.f32.mrb[8].mxu1 }
 0x2c3   :  { %v490_v24 = vadd.f32 %v736_v21, %v395_v20  ;;  %v484_v25 = vpop.f32.mrb[9].mxu1 }
 0x2c4   :  { %v485_v26 = vadd.f32 %v484_v25, %v391_v19 }
 0x2c5   :  { %v504_v30 = vadd.f32 %v490_v24, %v940_v23 }
 0x2c6   :  { %v739_v31 = vpop.f32.mrb[10].mxu1  ;;  %v503_v32 = vadd.f32 %v485_v26, %v935_v22 }
 0x2c7   :  { %v500_v34 = vadd.f32 %v739_v31, %v403_v27  ;;  %509 = vadd.xlane.f32.xlu0 %v504_v30  ;;  %v494_v35 = vpop.f32.mrb[11].mxu1 }
 0x2c8   :  { %v495_v36 = vadd.f32 %v494_v35, %v399_v33  ;;  %507 = vadd.xlane.f32.xlu1 %v503_v32 }
 0x2c9   :  { %v506_v37 = vadd.f32 %v500_v34, %v952_v29 }
 0x2ca   :  { %v505_v38 = vadd.f32 %v495_v36, %v947_v28 }
 0x2cc   :  { %511 = vadd.xlane.f32.xlu0 %v505_v38  ;;  %513 = vadd.xlane.f32.xlu1 %v506_v37 }
 0x354   :  { %v510_v39 = vpop.xlane.xlu0 %509 }
 0x355   :  { %v517_v40 = vmul.f32 0.0078125, %v510_v39  ;;  %v508_v41 = vpop.xlane.xlu1 %507 }
 0x356   :  { %v516_v42 = vmul.f32 0.0078125, %v508_v41 }
 0x357   :  { %v521_v23 = vsub.f32 %v504_v30, %v517_v40 }
 0x358   :  { %v520_v43 = vsub.f32 %v503_v32, %v516_v42 }
 0x359   :  { %v512_v44 = vpop.xlane.xlu0 %511  ;;  %v514_v22 = vpop.xlane.xlu1 %513  ;;  %v525_v45 = vmul.f32 %v521_v23, %v521_v23 }
 0x35a   :  { %v518_v46 = vmul.f32 0.0078125, %v512_v44  ;;  %v519_v47 = vmul.f32 0.0078125, %v514_v22  ;;  %v524_v48 = vmul.f32 %v520_v43, %v520_v43 }
 0x35b   :  { %530 = vadd.xlane.f32.xlu1 %v525_v45 }
 0x35c   :  { %v522_v49 = vsub.f32 %v505_v38, %v518_v46  ;;  %v992_v50 = vsub.f32 %v506_v37, %v519_v47  ;;  %528 = vadd.xlane.f32.xlu0 %v524_v48 }
 0x35e   :  { %v526_v28 = vmul.f32 %v522_v49, %v522_v49  ;;  %v527_v29 = vmul.f32 %v992_v50, %v992_v50 }
 0x360   :  { %532 = vadd.xlane.f32.xlu0 %v526_v28  ;;  %534 = vadd.xlane.f32.xlu1 %v527_v29 }
 0x3e8   :  { %v531_v52 = vpop.xlane.xlu1 %530 }
 0x3e9   :  { %v537_v53 = vmul.f32 0.0078125, %v531_v52  ;;  %v529_v54 = vpop.xlane.xlu0 %528 }
 0x3ea   :  { %v536_v55 = vmul.f32 0.0078125, %v529_v54 }
 0x3eb   :  { %v541_v56 = vadd.f32 1e-05, %v537_v53 }
 0x3ec   :  { %v540_v57 = vadd.f32 1e-05, %v536_v55 }
 0x3ed   :  { %806 = vrsqrt.f32 %v541_v56  ;;  %v535_v58 = vpop.xlane.xlu1 %534  ;;  %v533_v60 = vpop.xlane.xlu0 %532 }
 0x3ee   :  { %808 = vrsqrt.f32 %v540_v57  ;;  %v539_v59 = vmul.f32 0.0078125, %v535_v58  ;;  %v538_v0 = vmul.f32 0.0078125, %v533_v60 }
 0x3f0   :  { %v543_v1 = vadd.f32 1e-05, %v539_v59  ;;  %v542_v3 = vadd.f32 1e-05, %v538_v0 }
 0x3f2   :  { %810 = vrsqrt.f32 %v543_v1 }
 0x3f3   :  { %812 = vrsqrt.f32 %v542_v3 }
 0x3f7   :  { %v807_v61 = vpop.eup %806 }
 0x3f8   :  { %v809_v62 = vpop.eup %808  ;;  %v549_v63 = vmul.f32 %v807_v61, %v923_v17 }
 0x3f9   :  { %v548_v2 = vmul.f32 %v809_v62, %v911_v14 }
 0x3fa   :  { %559 = vperm.xlu1 %793, %v549_v63  }
 0x3fb   :  { %554 = vperm.xlu0 %792, %v548_v2  }
 0x3fc   :  { %v811_v5 = vpop.eup %810 }
 0x3fd   :  { %v551_v6 = vmul.f32 %v811_v5, %v928_v18  ;;  %v813_v7 = vpop.eup %812 }
 0x3fe   :  { %794 = vset.pattern.permute.xlu1 %v842_v4  ;;  %v550_v8 = vmul.f32 %v813_v7, %v916_v15 }
 0x3ff   :  { %577 = vperm.xlu1 %794, %v911_v14   ;;  %797 = vset.pattern.permute.xlu0 %v842_v4 }
 0x403   :  { %581 = vperm.xlu1 %794, %v923_v17  }
 0x407   :  { %585 = vperm.xlu1 %794, %v916_v15  }
 0x40b   :  { %795 = vset.pattern.permute.xlu1 %v841_v51 }
 0x40c   :  { %569 = vperm.xlu1 %795, %v551_v6  }
 0x410   :  { %564 = vperm.xlu1 %795, %v550_v8  }
 0x414   :  { %796 = vset.pattern.permute.xlu1 %v842_v4 }
 0x415   :  { %589 = vperm.xlu1 %796, %v928_v18  }
 0x479   :  { %v560_v9 = vpop.permute.xlu1 %559 }
 0x47a   :  { %v555_v14 = vpop.permute.xlu0 %554  ;;  %v573_v17 = vmul.f32 %v560_v9, %v521_v23 }
 0x47b   :  { %v572_v10 = vmul.f32 %v555_v14, %v520_v43 }
 0x47e   :  { %v578_v11 = vpop.permute.xlu1 %577 }
 0x47f   :  { %v592_v12 = vadd.f32 %v578_v11, %v572_v10 }
 0x481   :  { %596 = vst [vmem:[#allocation2] sm:$0xff] %v592_v12 }
 0x482   :  { %v582_v13 = vpop.permute.xlu1 %581 }
 0x483   :  { %v593_v16 = vadd.f32 %v582_v13, %v573_v17 }
 0x485   :  { %597 = vst [vmem:[#allocation2 + $0x8] sm:$0xff] %v593_v16 }
 0x486   :  { %v586_v19 = vpop.permute.xlu1 %585 }
 0x48b   :  { %v570_v20 = vpop.permute.xlu1 %569 }
 0x48c   :  { %v575_v15 = vmul.f32 %v570_v20, %v992_v50 }
 0x48f   :  { %v565_v21 = vpop.permute.xlu1 %564 }
 0x490   :  { %v574_v24 = vmul.f32 %v565_v21, %v522_v49 }
 0x492   :  { %v594_v25 = vadd.f32 %v586_v19, %v574_v24 }
 0x494   :  { %598 = vst [vmem:[#allocation2 + $0x10] sm:$0xff] %v594_v25  ;;  %v590_v18 = vpop.permute.xlu1 %589 }
 0x495   :  { %v595_v26 = vadd.f32 %v590_v18, %v575_v15 }
 0x497   :  { %599 = vst [vmem:[#allocation2 + $0x18] sm:$0xff] %v595_v26 }
 0x498   :  { %825 = shalt.err (!%p822_p4)
}
 0x499   :  { %s826_s12 = scalar_lea.hbm %s1023_s6, 512 }
 0x49a   :  { %p827_p5 = scmp.ne.s32.totalorder %s1023_s6, %s826_s12  ;;  %p830_p6 = scmp.lt.u32.totalorder %s826_s12, %s1023_s6 }
 0x49c   :  { %p832_p7 = pnand %p830_p6, %p827_p5 }
 0x49e   :  { %835 = shalt.err (!%p832_p7)
}
 0x49f   :  { %s844_s17 = smov 128   ;;  %s845_s18 = smov 8  }
 0x4a0   :  { %611 = dma.vmem_to_hbm [thread:$0]  %s606_s1, 512, %s1023_s6, [#allocation3], %s844_s17, %s844_s17, %s845_s18  }
 0x4a1   :  { %836 = dma.done.wait [#allocation3], 512  }
 0x4a2   :  { %837 = vsyncadd [#allocation3], 4294966784 }
 0x4a3   :  { %615 = vsyncpa [#allocation3], 1 }

</bundles_post_ra>
